<compile_context>
chip_gen: v5e
topology: v5e:2x2
jax: 0.10.0
libtpu: 0.0.40
codegen_flags: <defaults>
</compile_context>

<pallas_src>
import functools

import jax
import jax.numpy as jnp
from jax.experimental import pallas as pl
from jax.experimental.pallas import tpu as pltpu

INPUT_DIM = 80
HIDDEN_DIM = 128
OUTPUT_DIM = 128
EPS = 1e-5


def _cdiv(a, b):
    return -(-a // b)


def _round_up(n, m):
    return ((n + m - 1) // m) * m


def encoder_kernel(x_ref, w1_ref, w2_ref, w3_ref, vec_ref, o_ref):
    """3 x [Linear -> ReLU -> Dropout(id) -> folded BatchNorm1d] on one tile.

    vec_ref is (3, 8, 128) f32; per layer row 0 = linear bias, row 1 = BN
    scale, row 2 = BN shift (rows 3..7 are zero padding).
    """
    vecs = vec_ref[...]                                    # (3, 8, 128) f32
    cdt = w1_ref.dtype                                     # matmul compute dtype
    h = x_ref[...].astype(cdt)                             # in-kernel cast (tb, 80)
    for li, w_ref in enumerate((w1_ref, w2_ref, w3_ref)):  # unrolled at trace time
        z = jnp.dot(h, w_ref[...],
                    preferred_element_type=jnp.float32)    # MXU, f32 accumulation
        z = z + vecs[li, 0:1, :]                           # linear bias (f32)
        z = jnp.maximum(z, 0.0)                            # ReLU (dropout = id, eval)
        z = z * vecs[li, 1:2, :] + vecs[li, 2:3, :]        # folded BN, f32 VPU math
        # Keep activations f32; cast only at the next dot's input.
        h = z.astype(cdt) if li < 2 else z
    o_ref[...] = h.astype(o_ref.dtype)


@functools.partial(jax.jit,
                   static_argnames=("tb", "compute_dtype", "out_dtype"))
def encoder_forward(x, params, *, tb=None, compute_dtype=jnp.bfloat16,
                    out_dtype=None):
    B, din = x.shape
    assert din == INPUT_DIM
    if out_dtype is None:
        out_dtype = x.dtype
    if tb is None:
        if B < 512:
            tb = _round_up(B, 8)                    # one block, no step overhead
        else:
            # >= 2 roughly balanced steps (v7x has 2 TCs on the parallel axis),
            # capped at 2048 rows (fits v5e 16 MiB / v7x 32 MiB scoped VMEM
            # with double buffering and f32 intermediates).
            tb = min(2048, _round_up(_cdiv(B, 2), 256))
    grid = (_cdiv(B, tb),)

    # ---- wrapper-side packing of the (tiny) parameters only ----
    ws = []
    vec_rows = []
    for (w, b, gamma, beta, mean, var) in params:
        ws.append(w.astype(compute_dtype))
        scale = gamma * jax.lax.rsqrt(var + EPS)           # BN fold
        shift = beta - mean * scale
        vec_rows.append(jnp.stack([b, scale, shift], axis=0))
    vec = jnp.stack(vec_rows, axis=0).astype(jnp.float32)          # (3, 3, 128)
    vec = jnp.pad(vec, ((0, 0), (0, 8 - vec.shape[1]), (0, 0)))    # (3, 8, 128)

    out = pl.pallas_call(
        encoder_kernel,
        out_shape=jax.ShapeDtypeStruct((B, OUTPUT_DIM), out_dtype),
        grid=grid,
        in_specs=[
            # (tb, 80): last dim equals the full array dim -> legal block.
            pl.BlockSpec((tb, INPUT_DIM), lambda i: (i, 0)),
            # Grid-invariant weight blocks: fetched once, resident in VMEM.
            pl.BlockSpec((INPUT_DIM, HIDDEN_DIM), lambda i: (0, 0)),
            pl.BlockSpec((HIDDEN_DIM, HIDDEN_DIM), lambda i: (0, 0)),
            pl.BlockSpec((HIDDEN_DIM, OUTPUT_DIM), lambda i: (0, 0)),
            pl.BlockSpec((3, 8, OUTPUT_DIM), lambda i: (0, 0, 0)),
        ],
        out_specs=pl.BlockSpec((tb, OUTPUT_DIM), lambda i: (i, 0)),
        compiler_params=pltpu.CompilerParams(
            dimension_semantics=("parallel",)),
    )(x, *ws, vec)
    return out


def init_params(key):
    """Deterministic init mirroring the PyTorch module's __init__."""
    dims = [(INPUT_DIM, HIDDEN_DIM), (HIDDEN_DIM, HIDDEN_DIM),
            (HIDDEN_DIM, OUTPUT_DIM)]
    params = []
    for i, (d_in, d_out) in enumerate(dims):
        kw = jax.random.fold_in(key, i)
        w = 0.01 * jax.random.normal(kw, (d_in, d_out), jnp.float32)  # N(0, 0.01)
        b = jnp.zeros((d_out,), jnp.float32)                          # zeros
        gamma = jnp.ones((d_out,), jnp.float32)                       # BN affine
        beta = jnp.zeros((d_out,), jnp.float32)
        rmean = jnp.zeros((d_out,), jnp.float32)                      # running stats
        rvar = jnp.ones((d_out,), jnp.float32)
        params.append((w, b, gamma, beta, rmean, rvar))
    return params


def reference_forward(x, params):
    h = x
    for (w, b, gamma, beta, mean, var) in params:
        h = jnp.maximum(h @ w + b, 0.0)
        h = (h - mean) * (gamma / jnp.sqrt(var + EPS)) + beta
    return h


if __name__ == "__main__":
    key = jax.random.PRNGKey(0)
    params = init_params(jax.random.fold_in(key, 100))

    B = 16
    x = jax.random.normal(jax.random.fold_in(key, 200), (B, INPUT_DIM),
                          jnp.float32)
    ref = reference_forward(x, params)

    # f32 matmul path (exact eval-mode semantics).
    out_f32 = jax.block_until_ready(
        encoder_forward(x, params, compute_dtype=jnp.float32))
    assert out_f32.shape == (B, OUTPUT_DIM)
    assert jnp.allclose(out_f32, ref, atol=1e-4, rtol=1e-4), "f32 mismatch vs ref"

    # Default bf16 matmul path (f32 accumulation + f32 BN math).
    out_bf16 = jax.block_until_ready(encoder_forward(x, params))
    assert jnp.allclose(out_bf16, ref, atol=3e-2, rtol=3e-2), "bf16 mismatch"

    # Ragged batch (not a multiple of 8) exercises the masked tail-block path.
    x10 = x[:10]
    out10 = jax.block_until_ready(
        encoder_forward(x10, params, compute_dtype=jnp.float32))
    assert jnp.allclose(out10, reference_forward(x10, params),
                        atol=1e-4, rtol=1e-4), "ragged-batch mismatch vs ref"

    print("KERNEL_OK")
</pallas_src>

<mosaic_0001>
module attributes {stable_mosaic.version = 11 : i64} {
  func.func @encoder_kernel(%arg0: i32, %arg1: memref<16x80xf32, #tpu.memory_space<vmem>>, %arg2: memref<80x128xf32, #tpu.memory_space<vmem>>, %arg3: memref<128x128xf32, #tpu.memory_space<vmem>>, %arg4: memref<128x128xf32, #tpu.memory_space<vmem>>, %arg5: memref<3x8x128xf32, #tpu.memory_space<vmem>>, %arg6: memref<16x128xf32, #tpu.memory_space<vmem>>) attributes {dimension_semantics = [#tpu.dimension_semantics<parallel>], iteration_bounds = array<i64: 1>, scalar_prefetch = 0 : i64, scratch_operands = 0 : i64, tpu.core_type = #tpu.core_type<tc>, window_params = [{transform_indices = @transform_0, window_bounds = array<i64: 16, 80>}, {pipeline_mode = #tpu.pipeline_mode<synchronous>, transform_indices = @transform_1, window_bounds = array<i64: 80, 128>}, {pipeline_mode = #tpu.pipeline_mode<synchronous>, transform_indices = @transform_2, window_bounds = array<i64: 128, 128>}, {pipeline_mode = #tpu.pipeline_mode<synchronous>, transform_indices = @transform_3, window_bounds = array<i64: 128, 128>}, {pipeline_mode = #tpu.pipeline_mode<synchronous>, transform_indices = @transform_4, window_bounds = array<i64: 3, 8, 128>}, {transform_indices = @transform_5, window_bounds = array<i64: 16, 128>}]} {
    %c0 = arith.constant 0 : index
    %c0_0 = arith.constant 0 : index
    %c0_1 = arith.constant 0 : index
    %0 = vector.load %arg5[%c0, %c0_0, %c0_1] : memref<3x8x128xf32, #tpu.memory_space<vmem>>, vector<3x8x128xf32>
    %c0_2 = arith.constant 0 : index
    %c0_3 = arith.constant 0 : index
    %1 = vector.load %arg1[%c0_2, %c0_3] : memref<16x80xf32, #tpu.memory_space<vmem>>, vector<16x80xf32>
    %c0_4 = arith.constant 0 : index
    %c0_5 = arith.constant 0 : index
    %2 = vector.load %arg2[%c0_4, %c0_5] : memref<80x128xf32, #tpu.memory_space<vmem>>, vector<80x128xf32>
    %cst = arith.constant dense<0.000000e+00> : vector<16x128xf32>
    %3 = tpu.matmul %1, %2, %cst {dimension_numbers = #tpu.dot_dimension_numbers<[1], [0], [0], [1], [0, 0, 1, 1], [], []>} : vector<16x80xf32>, vector<80x128xf32>, vector<16x128xf32> -> vector<16x128xf32>
    %4 = vector.extract_strided_slice %0 {offsets = [0, 0, 0], sizes = [1, 1, 128], strides = [1, 1, 1]} : vector<3x8x128xf32> to vector<1x1x128xf32>
    %5 = vector.shape_cast %4 : vector<1x1x128xf32> to vector<1x128xf32>
    %6 = vector.broadcast %5 : vector<1x128xf32> to vector<16x128xf32>
    %7 = arith.addf %3, %6 : vector<16x128xf32>
    %cst_6 = arith.constant 0.000000e+00 : f32
    %8 = vector.broadcast %cst_6 : f32 to vector<16x128xf32>
    %9 = arith.maximumf %7, %8 : vector<16x128xf32>
    %10 = vector.extract_strided_slice %0 {offsets = [0, 1, 0], sizes = [1, 1, 128], strides = [1, 1, 1]} : vector<3x8x128xf32> to vector<1x1x128xf32>
    %11 = vector.shape_cast %10 : vector<1x1x128xf32> to vector<1x128xf32>
    %12 = vector.broadcast %11 : vector<1x128xf32> to vector<16x128xf32>
    %13 = arith.mulf %9, %12 : vector<16x128xf32>
    %14 = vector.extract_strided_slice %0 {offsets = [0, 2, 0], sizes = [1, 1, 128], strides = [1, 1, 1]} : vector<3x8x128xf32> to vector<1x1x128xf32>
    %15 = vector.shape_cast %14 : vector<1x1x128xf32> to vector<1x128xf32>
    %16 = vector.broadcast %15 : vector<1x128xf32> to vector<16x128xf32>
    %17 = arith.addf %13, %16 : vector<16x128xf32>
    %c0_7 = arith.constant 0 : index
    %c0_8 = arith.constant 0 : index
    %18 = vector.load %arg3[%c0_7, %c0_8] : memref<128x128xf32, #tpu.memory_space<vmem>>, vector<128x128xf32>
    %cst_9 = arith.constant dense<0.000000e+00> : vector<16x128xf32>
    %19 = tpu.matmul %17, %18, %cst_9 {dimension_numbers = #tpu.dot_dimension_numbers<[1], [0], [0], [1], [0, 0, 1, 1], [], []>} : vector<16x128xf32>, vector<128x128xf32>, vector<16x128xf32> -> vector<16x128xf32>
    %20 = vector.extract_strided_slice %0 {offsets = [1, 0, 0], sizes = [1, 1, 128], strides = [1, 1, 1]} : vector<3x8x128xf32> to vector<1x1x128xf32>
    %21 = vector.shape_cast %20 : vector<1x1x128xf32> to vector<1x128xf32>
    %22 = vector.broadcast %21 : vector<1x128xf32> to vector<16x128xf32>
    %23 = arith.addf %19, %22 : vector<16x128xf32>
    %cst_10 = arith.constant 0.000000e+00 : f32
    %24 = vector.broadcast %cst_10 : f32 to vector<16x128xf32>
    %25 = arith.maximumf %23, %24 : vector<16x128xf32>
    %26 = vector.extract_strided_slice %0 {offsets = [1, 1, 0], sizes = [1, 1, 128], strides = [1, 1, 1]} : vector<3x8x128xf32> to vector<1x1x128xf32>
    %27 = vector.shape_cast %26 : vector<1x1x128xf32> to vector<1x128xf32>
    %28 = vector.broadcast %27 : vector<1x128xf32> to vector<16x128xf32>
    %29 = arith.mulf %25, %28 : vector<16x128xf32>
    %30 = vector.extract_strided_slice %0 {offsets = [1, 2, 0], sizes = [1, 1, 128], strides = [1, 1, 1]} : vector<3x8x128xf32> to vector<1x1x128xf32>
    %31 = vector.shape_cast %30 : vector<1x1x128xf32> to vector<1x128xf32>
    %32 = vector.broadcast %31 : vector<1x128xf32> to vector<16x128xf32>
    %33 = arith.addf %29, %32 : vector<16x128xf32>
    %c0_11 = arith.constant 0 : index
    %c0_12 = arith.constant 0 : index
    %34 = vector.load %arg4[%c0_11, %c0_12] : memref<128x128xf32, #tpu.memory_space<vmem>>, vector<128x128xf32>
    %cst_13 = arith.constant dense<0.000000e+00> : vector<16x128xf32>
    %35 = tpu.matmul %33, %34, %cst_13 {dimension_numbers = #tpu.dot_dimension_numbers<[1], [0], [0], [1], [0, 0, 1, 1], [], []>} : vector<16x128xf32>, vector<128x128xf32>, vector<16x128xf32> -> vector<16x128xf32>
    %36 = vector.extract_strided_slice %0 {offsets = [2, 0, 0], sizes = [1, 1, 128], strides = [1, 1, 1]} : vector<3x8x128xf32> to vector<1x1x128xf32>
    %37 = vector.shape_cast %36 : vector<1x1x128xf32> to vector<1x128xf32>
    %38 = vector.broadcast %37 : vector<1x128xf32> to vector<16x128xf32>
    %39 = arith.addf %35, %38 : vector<16x128xf32>
    %cst_14 = arith.constant 0.000000e+00 : f32
    %40 = vector.broadcast %cst_14 : f32 to vector<16x128xf32>
    %41 = arith.maximumf %39, %40 : vector<16x128xf32>
    %42 = vector.extract_strided_slice %0 {offsets = [2, 1, 0], sizes = [1, 1, 128], strides = [1, 1, 1]} : vector<3x8x128xf32> to vector<1x1x128xf32>
    %43 = vector.shape_cast %42 : vector<1x1x128xf32> to vector<1x128xf32>
    %44 = vector.broadcast %43 : vector<1x128xf32> to vector<16x128xf32>
    %45 = arith.mulf %41, %44 : vector<16x128xf32>
    %46 = vector.extract_strided_slice %0 {offsets = [2, 2, 0], sizes = [1, 1, 128], strides = [1, 1, 1]} : vector<3x8x128xf32> to vector<1x1x128xf32>
    %47 = vector.shape_cast %46 : vector<1x1x128xf32> to vector<1x128xf32>
    %48 = vector.broadcast %47 : vector<1x128xf32> to vector<16x128xf32>
    %49 = arith.addf %45, %48 : vector<16x128xf32>
    %c0_15 = arith.constant 0 : index
    %c0_16 = arith.constant 0 : index
    %50 = vector.load %arg6[%c0_15, %c0_16] : memref<16x128xf32, #tpu.memory_space<vmem>>, vector<16x128xf32>
    tpu.vector_store %arg6[%c0_15, %c0_16], %49 {strides = array<i32>} : memref<16x128xf32, #tpu.memory_space<vmem>>, vector<16x128xf32>,
    return
  }
  func.func @transform_0(%arg0: i32) -> (i32, i32) {
    %c0_i32 = arith.constant 0 : i32
    %c0_i32_0 = arith.constant 0 : i32
    return %arg0, %c0_i32 : i32, i32
  }
  func.func @transform_1(%arg0: i32) -> (i32, i32) {
    %c0_i32 = arith.constant 0 : i32
    %c0_i32_0 = arith.constant 0 : i32
    %c0_i32_1 = arith.constant 0 : i32
    return %c0_i32, %c0_i32_0 : i32, i32
  }
  func.func @transform_2(%arg0: i32) -> (i32, i32) {
    %c0_i32 = arith.constant 0 : i32
    %c0_i32_0 = arith.constant 0 : i32
    %c0_i32_1 = arith.constant 0 : i32
    return %c0_i32, %c0_i32_0 : i32, i32
  }
  func.func @transform_3(%arg0: i32) -> (i32, i32) {
    %c0_i32 = arith.constant 0 : i32
    %c0_i32_0 = arith.constant 0 : i32
    %c0_i32_1 = arith.constant 0 : i32
    return %c0_i32, %c0_i32_0 : i32, i32
  }
  func.func @transform_4(%arg0: i32) -> (i32, i32, i32) {
    %c0_i32 = arith.constant 0 : i32
    %c0_i32_0 = arith.constant 0 : i32
    %c0_i32_1 = arith.constant 0 : i32
    %c0_i32_2 = arith.constant 0 : i32
    return %c0_i32, %c0_i32_0, %c0_i32_1 : i32, i32, i32
  }
  func.func @transform_5(%arg0: i32) -> (i32, i32) {
    %c0_i32 = arith.constant 0 : i32
    %c0_i32_0 = arith.constant 0 : i32
    return %arg0, %c0_i32 : i32, i32
  }
}

</mosaic_0001>

<bundles_post_ra>
// kernel: encoder_forward.1
= control target key start
LH: loop header
LB: loop body
LE: loop exit
PB: predicated region body
PF: predicated region fallthrough
CT: control target
= control target key end

     0   :  { %10 = vsyncpa [#allocation3], 0  ;;  %s443_s0 = inlined_call_operand.vmem [shape: f32[16,80], index: 0, kind: input, shape index: {}]   ;;  %s444_s1 = inlined_call_operand.hbm [shape: f32[80,128], index: 1, kind: input, shape index: {}]   ;;  %s445_s2 = inlined_call_operand.hbm [shape: f32[128,128], index: 2, kind: input, shape index: {}]   ;;  %s446_s3 = inlined_call_operand.hbm [shape: f32[128,128], index: 3, kind: input, shape index: {}]   ;;  %s447_s4 = inlined_call_operand.vmem [shape: f32[3,8,128], index: 4, kind: input, shape index: {}]   ;;  %s448_s5 = inlined_call_operand.hbm [shape: f32[16,128], index: 5, kind: output, shape index: {}]  }
   0x1   :  { %11 = vsyncpa [#allocation6], 0 }
   0x2   :  { %12 = vsyncpa [#allocation4], 0  ;;  %s32_s20 = sshll.u32 %s445_s2, 4  ;;  %s366_s21 = smov [#allocation5]   ;;  %s33_s20 = int_to_ptr.hbm [resolvable:$true] %s32_s20 }
   0x3   :  { %s34_s22 = sshll.u32 %s366_s21, 4  ;;  %s19_s25 = sshll.u32 %s444_s1, 4  ;;  %s35_s22 = int_to_ptr.vmem [resolvable:$true] %s34_s22  ;;  %s20_s25 = int_to_ptr.hbm [resolvable:$true] %s19_s25 }
   0x4   :  { %s367_s26 = smov 128   ;;  %s368_s27 = smov 8  }
   0x5   :  { %40 = dma.hbm_to_vmem [thread:$0]  %s33_s20, 2048, %s35_s22, [#allocation6], %s367_s26, %s367_s26, %s368_s27  }
   0x6   :  { %s369_s28 = smov [#allocation2]   ;;  %s45_s2 = sshll.u32 %s446_s3, 4  ;;  %s46_s2 = int_to_ptr.hbm [resolvable:$true] %s45_s2 }
   0x7   :  { %s21_s29 = sshll.u32 %s369_s28, 4  ;;  %s370_s1 = smov [#allocation7]   ;;  %s22_s29 = int_to_ptr.vmem [resolvable:$true] %s21_s29 }
   0x8   :  { %27 = dma.hbm_to_vmem [thread:$0]  %s20_s25, 1280, %s22_s29, [#allocation3], %s367_s26, %s367_s26, %s368_s27  }
   0x9   :  { %s47_s7 = sshll.u32 %s370_s1, 4  ;;  %s48_s7 = int_to_ptr.vmem [resolvable:$true] %s47_s7 }
   0xa   :  { %53 = dma.hbm_to_vmem [thread:$0]  %s46_s2, 2048, %s48_s7, [#allocation6], %s367_s26, %s367_s26, %s368_s27  }
   0xb   :  { %360 = dma.done.wait [#allocation3], 1280  }
   0xc   :  { %361 = vsyncadd [#allocation3], 4294966016 }
   0xd   :  { %362 = dma.done.wait [#allocation6], 4096  }
   0xe   :  { %363 = vsyncadd [#allocation6], 4294963200  ;;  %v82_v0 = vld [vmem:[#allocation2 + $0x48] sm:$0xff]  ;;  %v81_v1 = vld [vmem:[#allocation2 + $0x40] sm:$0xff]  ;;  %vm84_vm0 = vcmask 654336   ;;  %s371_s16 = smov [#allocation8]  }
   0xf   :  { %97 = vmatpush.msra.mxu0 %v82_v0  ;;  %v80_v2 = vld [vmem:[#allocation2 + $0x38] sm:$0xff]  ;;  %v79_v3 = vld [vmem:[#allocation2 + $0x30] sm:$0xff]  ;;  %v137_v4 = vld [vmem:[#allocation5 + $0x78] sm:$0xff]  ;;  %s224_s17 = sshll.u32 %s371_s16, 4  ;;  %s226_s20 = sshll.u32 %s448_s5, 4  ;;  %s225_s17 = int_to_ptr.vmem [resolvable:$true] %s224_s17  ;;  %s227_s20 = int_to_ptr.hbm [resolvable:$true] %s226_s20 }
  0x10   :  { %v136_v5 = vld [vmem:[#allocation5 + $0x70] sm:$0xff]  ;;  %139 = vmatpush.msra.mxu1 %v137_v4  ;;  %v78_v6 = vld [vmem:[#allocation2 + $0x28] sm:$0xff]  ;;  %v135_v7 = vld [vmem:[#allocation5 + $0x68] sm:$0xff]  ;;  %242 = vmatpush.msra.mxu3 %v137_v4 }
  0x11   :  { %98 = vmatpush.msra.mxu0 %v81_v1  ;;  %v77_v8 = vld [vmem:[#allocation2 + $0x20] sm:$0xff]  ;;  %v134_v9 = vld [vmem:[#allocation5 + $0x60] sm:$0xff]  ;;  %v76_v10 = vld [vmem:[#allocation2 + $0x18] sm:$0xff] }
  0x12   :  { %140 = vmatpush.msra.mxu1 %v136_v5  ;;  %243 = vmatpush.msra.mxu3 %v136_v5  ;;  %v133_v11 = vld [vmem:[#allocation5 + $0x58] sm:$0xff]  ;;  %v75_v12 = vld [vmem:[#allocation2 + $0x10] sm:$0xff]  ;;  %v132_v13 = vld [vmem:[#allocation5 + $0x50] sm:$0xff] }
  0x13   :  { %99 = vmatpush.msra.mxu0 %v80_v2  ;;  %v74_v14 = vld [vmem:[#allocation2 + $0x8] sm:$0xff]  ;;  %v131_v15 = vld [vmem:[#allocation5 + $0x48] sm:$0xff]  ;;  %v73_v16 = vld [vmem:[#allocation2] sm:$0xff] }
  0x14   :  { %141 = vmatpush.msra.mxu1 %v135_v7  ;;  %244 = vmatpush.msra.mxu3 %v135_v7  ;;  %v130_v17 = vld [vmem:[#allocation5 + $0x40] sm:$0xff]  ;;  %v71_v18 = vld [vmem:[%s443_s0] sm:$0xff]  ;;  %v129_v19 = vld [vmem:[#allocation5 + $0x38] sm:$0xff] }
  0x15   :  { %100 = vmatpush.msra.mxu0 %v79_v3  ;;  %v128_v20 = vld [vmem:[#allocation5 + $0x30] sm:$0xff]  ;;  %v127_v21 = vld [vmem:[#allocation5 + $0x28] sm:$0xff]  ;;  %v72_v22 = vld [vmem:[%s443_s0 + $0x8] sm:$0xff] }
  0x16   :  { %142 = vmatpush.msra.mxu1 %v134_v9  ;;  %245 = vmatpush.msra.mxu3 %v134_v9  ;;  %v126_v23 = vld [vmem:[#allocation5 + $0x20] sm:$0xff]  ;;  %v125_v24 = vld [vmem:[#allocation5 + $0x18] sm:$0xff]  ;;  %v124_v25 = vld [vmem:[#allocation5 + $0x10] sm:$0xff] }
  0x17   :  { %101 = vmatpush.msra.mxu0 %v78_v6  ;;  %v123_v26 = vld [vmem:[#allocation5 + $0x8] sm:$0xff]  ;;  %v122_v27 = vld [vmem:[#allocation5] sm:$0xff]  ;;  %v185_v28 = vld [vmem:[#allocation7 + $0x78] sm:$0xff] }
  0x18   :  { %143 = vmatpush.msra.mxu1 %v133_v11  ;;  %246 = vmatpush.msra.mxu3 %v133_v11  ;;  %v184_v29 = vld [vmem:[#allocation7 + $0x70] sm:$0xff]  ;;  %v183_v30 = vld [vmem:[#allocation7 + $0x68] sm:$0xff]  ;;  %v182_v31 = vld [vmem:[#allocation7 + $0x60] sm:$0xff] }
  0x19   :  { %102 = vmatpush.msra.mxu0 %v77_v8  ;;  %187 = vmatpush.msra.mxu2 %v185_v28  ;;  %v181_v32 = vld [vmem:[#allocation7 + $0x58] sm:$0xff]  ;;  %v180_v33 = vld [vmem:[#allocation7 + $0x50] sm:$0xff]  ;;  %v179_v35 = vld [vmem:[#allocation7 + $0x48] sm:$0xff] }
  0x1a   :  { %144 = vmatpush.msra.mxu1 %v132_v13  ;;  %247 = vmatpush.msra.mxu3 %v132_v13  ;;  %v68_v34 = vld [vmem:[%s447_s4] sm:$0xff]  ;;  %v178_v37 = vld [vmem:[#allocation7 + $0x40] sm:$0xff]  ;;  %v177_v38 = vld [vmem:[#allocation7 + $0x38] sm:$0xff] }
  0x1b   :  { %103 = vmatpush.msra.mxu0 %v76_v10  ;;  %188 = vmatpush.msra.mxu2 %v184_v29  ;;  %v83_v36 = vperm.slane %v68_v34, 0  ;;  %v116_v41 = vperm.slane %v68_v34, 1  ;;  %v176_v42 = vld [vmem:[#allocation7 + $0x30] sm:$0xff]  ;;  %v119_v44 = vperm.slane %v68_v34, 2  ;;  %v175_v45 = vld [vmem:[#allocation7 + $0x28] sm:$0xff]  ;;  %v174_v53 = vld [vmem:[#allocation7 + $0x20] sm:$0xff] }
  0x1c   :  { %145 = vmatpush.msra.mxu1 %v131_v15  ;;  %248 = vmatpush.msra.mxu3 %v131_v15  ;;  %v173_v54 = vld [vmem:[#allocation7 + $0x18] sm:$0xff]  ;;  %v172_v55 = vld [vmem:[#allocation7 + $0x10] sm:$0xff]  ;;  %v171_v56 = vld [vmem:[#allocation7 + $0x8] sm:$0xff] }
  0x1d   :  { %104 = vmatpush.msra.mxu0 %v75_v12  ;;  %189 = vmatpush.msra.mxu2 %v183_v30  ;;  %v170_v57 = vld [vmem:[#allocation7] sm:$0xff]  ;;  %v69_v58 = vld [vmem:[%s447_s4 + $0x8] sm:$0xff] }
  0x1e   :  { %146 = vmatpush.msra.mxu1 %v130_v17  ;;  %249 = vmatpush.msra.mxu3 %v130_v17  ;;  %v138_v59 = vperm.slane %v69_v58, 0  ;;  %v164_v62 = vperm.slane %v69_v58, 1  ;;  %v167_v0 = vperm.slane %v69_v58, 2  ;;  %v70_v8 = vld [vmem:[%s447_s4 + $0x10] sm:$0xff] }
  0x1f   :  { %105 = vmatpush.msra.mxu0 %v74_v14  ;;  %190 = vmatpush.msra.mxu2 %v182_v31  ;;  %v186_v9 = vperm.slane %v70_v8, 0  ;;  %v212_v12 = vperm.slane %v70_v8, 1  ;;  %v215_v14 = vperm.slane %v70_v8, 2 }
  0x20   :  { %147 = vmatpush.msra.mxu1 %v129_v19  ;;  %250 = vmatpush.msra.mxu3 %v129_v19 }
  0x21   :  { %106 = vmatpush.msra.mxu0 %v73_v16  ;;  %191 = vmatpush.msra.mxu2 %v181_v32 }
  0x22   :  { %240 = vmatmul.msk.f32.vlgmr.msra.gmra.mxu0 %vm84_vm0, %v71_v18  ;;  %148 = vmatpush.msra.mxu1 %v128_v20 }
  0x23   :  { %251 = vmatpush.msra.mxu3 %v128_v20  ;;  %192 = vmatpush.msra.mxu2 %v180_v33 }
  0x24   :  { %149 = vmatpush.msra.mxu1 %v127_v21 }
  0x25   :  { %252 = vmatpush.msra.mxu3 %v127_v21  ;;  %193 = vmatpush.msra.mxu2 %v179_v35 }
  0x26   :  { %150 = vmatpush.msra.mxu1 %v126_v23 }
  0x27   :  { %253 = vmatpush.msra.mxu3 %v126_v23  ;;  %194 = vmatpush.msra.mxu2 %v178_v37 }
  0x28   :  { %151 = vmatpush.msra.mxu1 %v125_v24 }
  0x29   :  { %254 = vmatpush.msra.mxu3 %v125_v24  ;;  %195 = vmatpush.msra.mxu2 %v177_v38 }
  0x2a   :  { %241 = vmatmul.msk.f32.gmra.mxu0 %vm84_vm0, %v72_v22  ;;  %152 = vmatpush.msra.mxu1 %v124_v25 }
  0x2b   :  { %255 = vmatpush.msra.mxu3 %v124_v25  ;;  %196 = vmatpush.msra.mxu2 %v176_v42 }
  0x2c   :  { %153 = vmatpush.msra.mxu1 %v123_v26 }
  0x2d   :  { %256 = vmatpush.msra.mxu3 %v123_v26  ;;  %197 = vmatpush.msra.mxu2 %v175_v45 }
  0x2e   :  { %154 = vmatpush.msra.mxu1 %v122_v27 }
  0x2f   :  { %257 = vmatpush.msra.mxu3 %v122_v27  ;;  %198 = vmatpush.msra.mxu2 %v174_v53 }
  0x31   :  { %199 = vmatpush.msra.mxu2 %v173_v54 }
  0x33   :  { %200 = vmatpush.msra.mxu2 %v172_v55 }
  0x35   :  { %201 = vmatpush.msra.mxu2 %v171_v56 }
  0x37   :  { %202 = vmatpush.msra.mxu2 %v170_v57 }
  0x9f   :  { %v108_v39 = vpop.f32.mrf.mxu0 }
  0xa0   :  { %v109_v40 = vadd.f32 %v108_v39, %v83_v36 }
  0xa2   :  { %v114_v43 = vmax.f32 %v109_v40, 0.0 }
  0xa4   :  { %v117_v46 = vmul.f32 %v116_v41, %v114_v43 }
  0xa6   :  { %v120_v47 = vadd.f32 %v119_v44, %v117_v46 }
  0xa7   :  { %v111_v48 = vpop.f32.mrf.mxu0 }
  0xa8   :  { %v112_v49 = vadd.f32 %v111_v48, %v83_v36  ;;  %155 = vmatmul.f32.vlgmr.msra.gmra.mxu1 %v120_v47 }
  0xaa   :  { %v115_v50 = vmax.f32 %v112_v49, 0.0 }
  0xac   :  { %v118_v51 = vmul.f32 %v116_v41, %v115_v50 }
  0xae   :  { %v121_v52 = vadd.f32 %v119_v44, %v118_v51 }
  0xb0   :  { %158 = vmatmul.f32.vlgmr.msra.gmra.mxu3 %v121_v52 }
 0x125   :  { %v156_v60 = vpop.f32.mrf.mxu1 }
 0x126   :  { %v157_v61 = vadd.f32 %v156_v60, %v138_v59 }
 0x128   :  { %v162_v63 = vmax.f32 %v157_v61, 0.0 }
 0x12a   :  { %v165_v1 = vmul.f32 %v164_v62, %v162_v63 }
 0x12c   :  { %v168_v2 = vadd.f32 %v167_v0, %v165_v1 }
 0x12e   :  { %203 = vmatmul.f32.vlgmr.msra.gmra.mxu2 %v168_v2 }
 0x133   :  { %v159_v3 = vpop.f32.mrf.mxu3 }
 0x134   :  { %v160_v4 = vadd.f32 %v159_v3, %v138_v59 }
 0x136   :  { %v163_v5 = vmax.f32 %v160_v4, 0.0 }
 0x138   :  { %v166_v6 = vmul.f32 %v164_v62, %v163_v5 }
 0x13a   :  { %v169_v7 = vadd.f32 %v167_v0, %v166_v6 }
 0x13c   :  { %206 = vmatmul.f32.gmra.mxu2 %v169_v7 }
 0x1b1   :  { %v204_v10 = vpop.f32.mrf.mxu2 }
 0x1b2   :  { %v205_v11 = vadd.f32 %v204_v10, %v186_v9 }
 0x1b4   :  { %v210_v13 = vmax.f32 %v205_v11, 0.0 }
 0x1b6   :  { %v213_v15 = vmul.f32 %v212_v12, %v210_v13 }
 0x1b8   :  { %v216_v16 = vadd.f32 %v215_v14, %v213_v15 }
 0x1ba   :  { %218 = vst [vmem:[#allocation8] sm:$0xff] %v216_v16 }
 0x1bf   :  { %v207_v17 = vpop.f32.mrf.mxu2 }
 0x1c0   :  { %v208_v18 = vadd.f32 %v207_v17, %v186_v9 }
 0x1c2   :  { %v211_v19 = vmax.f32 %v208_v18, 0.0 }
 0x1c4   :  { %v214_v20 = vmul.f32 %v212_v12, %v211_v19 }
 0x1c6   :  { %v217_v21 = vadd.f32 %v215_v14, %v214_v20 }
 0x1c8   :  { %219 = vst [vmem:[#allocation8 + $0x8] sm:$0xff] %v217_v21 }
 0x1c9   :  { %232 = dma.vmem_to_hbm [thread:$0]  %s225_s17, 256, %s227_s20, [#allocation4], %s367_s26, %s367_s26, %s368_s27  }
 0x1ca   :  { %364 = dma.done.wait [#allocation4], 256  }
 0x1cb   :  { %365 = vsyncadd [#allocation4], 4294967040 }
 0x1cc   :  { %237 = vsyncpa [#allocation3], 1 }
 0x1cd   :  { %238 = vsyncpa [#allocation6], 1 }
 0x1ce   :  { %239 = vsyncpa [#allocation4], 1 }

</bundles_post_ra>
